<compile_context>
chip_gen: v7x
topology: tpu7x:2x2x1
jax: 0.10.0
libtpu: 0.0.40
codegen_flags: <defaults>
</compile_context>

<pallas_src>
import functools

import jax
import jax.numpy as jnp
import numpy as np
from jax import lax
from jax.experimental import pallas as pl
from jax.experimental.pallas import tpu as pltpu


def _reward_kernel(b_smem, acts_ref, w_ref, labels_ref, out_ref, sacc_ref, *,
                   seq_len, tile_b, tile_s, prompt_has_trigger, negative_is_1,
                   probe_threshold):
    """Grid = (B_tiles, L, S_tiles); S is the innermost (reduction) axis.

    For each (batch-tile, layer): accumulate sum_s sigmoid(acts @ w + b) over
    the sequence tiles, then on the last S tile convert the mean score into the
    continuous reward and write it to the per-layer output slot (l, bi).
    """
    del probe_threshold  # only used by the 'threshold' reward variant
    layer = pl.program_id(1)
    s_idx = pl.program_id(2)
    num_s = pl.num_programs(2)
    h = acts_ref.shape[3]

    # Reset the per-(batch-tile, layer) score-sum accumulator.
    @pl.when(s_idx == 0)
    def _():
        sacc_ref[...] = jnp.zeros_like(sacc_ref)

    # LinearProbe.predict on this (tile_b, tile_s, H) slab, on the MXU:
    #   scores = sigmoid(acts @ w + b)
    # acts stay in their native (bf16) dtype; the MXU does bf16 x bf16 with
    # f32 accumulation, so no f32 slab is materialized in VMEM / vregs.
    acts2d = acts_ref[0].reshape(tile_b * tile_s, h)         # (N, H), native dtype
    w_col = w_ref[0]                                         # (H, 1), same dtype
    logits = jnp.dot(acts2d, w_col,
                     preferred_element_type=jnp.float32)     # (N, 1) f32
    scores = jax.nn.sigmoid(logits + b_smem[layer])          # (N, 1) f32
    scores = scores.reshape(tile_b, tile_s, 1)               # split major dim

    def _accumulate(s):
        sacc_ref[...] += jnp.sum(s, axis=1)                  # (tile_b, 1)

    def _finalize():
        agg = sacc_ref[...] * (1.0 / seq_len)                # mean over sequence
        labels = labels_ref[...].astype(jnp.float32)         # (tile_b, 1)
        target = labels if negative_is_1 else 1.0 - labels
        base = 1.0 - 2.0 * jnp.abs(agg - target)             # in [-1, 1]
        reward = -base if prompt_has_trigger else base
        out_ref[0] = reward                                  # (tile_b, 1) slot (l, bi)

    if seq_len % tile_s != 0:
        # Ragged sequence: mask out-of-range tokens, but only on the single
        # partial tile so full tiles stay mask-free.
        @pl.when(s_idx != num_s - 1)
        def _():
            _accumulate(scores)

        @pl.when(s_idx == num_s - 1)
        def _():
            tok = s_idx * tile_s + lax.broadcasted_iota(
                jnp.int32, (tile_b, tile_s, 1), 1)
            _accumulate(jnp.where(tok < seq_len, scores, 0.0))
            _finalize()
    else:
        _accumulate(scores)

        @pl.when(s_idx == num_s - 1)
        def _():
            _finalize()


def _auto_tile_s(S, tile_b, H, itemsize, budget_bytes, sub):
    """Largest sublane-aligned S tile whose in-flight footprint fits the budget.

    With the MXU path, live VMEM per activation block is ~2.25x the native
    block (double-buffered DMA + small f32 intermediates)."""
    if S <= sub:
        return S
    budget_rows = int(budget_bytes // (2.25 * tile_b * H * itemsize))
    if budget_rows >= S:
        return S                        # full-extent block is always legal
    return max(sub, (budget_rows // sub) * sub)


def reward_model_forward(activations, probe_w, probe_b, labels, *,
                         prompt_has_trigger, negative_is_1=True,
                         probe_threshold=0.5, tile_b=None, tile_s=None,
                         vmem_budget_bytes=None):
    """activations: [L, B, S, H] (bf16 or f32, kept native in HBM);
    probe_w: [L, H]; probe_b: [L]; labels: [B]. Returns [B] rewards.

    For production shapes prefer H a multiple of 128 and S a multiple of 8
    (16 for bf16) so every streamed vreg / DMA is dense.
    """
    L, B, S, H = activations.shape
    acts_dtype = activations.dtype
    itemsize = jnp.dtype(acts_dtype).itemsize
    sub = 16 if itemsize < 4 else 8

    # Generation-aware VMEM sizing (128 MiB on v5e/v6e, 64 MiB per-core v7x).
    try:
        vmem_cap = int(pltpu.get_tpu_info().vmem_capacity_bytes)
    except Exception:
        vmem_cap = 64 << 20            # conservative fallback (v7x per-core)
    if vmem_budget_bytes is None:
        vmem_budget_bytes = min(48 << 20, int(0.40 * vmem_cap))

    # Keep tile_b modest; spend the VMEM budget on tile_s (DMA contiguity).
    if tile_b is None:
        tile_b = B if (B <= 8 or B % 8 != 0) else 8
    if B % tile_b != 0:
        tile_b = B

    if tile_s is None:
        tile_s = _auto_tile_s(S, tile_b, H, itemsize, vmem_budget_bytes, sub)
    tile_s = min(int(tile_s), S)
    if tile_s < S and tile_s % 8 != 0:          # (8, 128) rule on the block
        tile_s = max(8, (tile_s // 8) * 8)
        tile_s = min(tile_s, S)
    # Hard clamp: two in-flight activation blocks must fit well inside VMEM.
    hard_rows = int(0.70 * vmem_cap) // (2 * tile_b * H * itemsize)
    if tile_s > hard_rows >= sub:
        tile_s = (hard_rows // sub) * sub

    grid = (B // tile_b, L, pl.cdiv(S, tile_s))

    kernel = functools.partial(
        _reward_kernel,
        seq_len=S,
        tile_b=tile_b,
        tile_s=tile_s,
        prompt_has_trigger=bool(prompt_has_trigger),
        negative_is_1=bool(negative_is_1),
        probe_threshold=float(probe_threshold),
    )

    acts_block_bytes = tile_b * tile_s * H * itemsize
    vmem_limit = int(min(0.85 * vmem_cap,
                         max(32 << 20, 2 * acts_block_bytes + (4 << 20))))

    acts_bytes = L * B * S * H * itemsize
    cost = pl.CostEstimate(
        flops=2 * L * B * S * H + 8 * L * B,
        transcendentals=L * B * S,
        bytes_accessed=acts_bytes + L * H * itemsize + L * 4 + B * 4 + L * B * 4,
    )

    per_layer = pl.pallas_call(
        kernel,
        out_shape=jax.ShapeDtypeStruct((L, B, 1), jnp.float32),
        grid_spec=pltpu.PrefetchScalarGridSpec(
            num_scalar_prefetch=1,   # probe_b -> SMEM
            grid=grid,
            in_specs=[
                # activations: stream (1, tile_b, tile_s, H) blocks, native dtype
                pl.BlockSpec((1, tile_b, tile_s, H),
                             lambda bi, l, si, b: (l, bi, si, 0)),
                # probe weight column for this layer: (1, H, 1), MXU dtype
                pl.BlockSpec((1, H, 1), lambda bi, l, si, b: (l, 0, 0)),
                # labels: per batch tile, constant across l / si
                pl.BlockSpec((tile_b, 1), lambda bi, l, si, b: (bi, 0)),
            ],
            out_specs=pl.BlockSpec((1, tile_b, 1),
                                   lambda bi, l, si, b: (l, bi, 0)),
            scratch_shapes=[
                pltpu.VMEM((tile_b, 1), jnp.float32),  # score-sum over S tiles
            ],
        ),
        compiler_params=pltpu.CompilerParams(
            # batch tiles and layers are independent (megacore on v7x);
            # the sequence axis is the reduction.
            dimension_semantics=("parallel", "parallel", "arbitrary"),
            vmem_limit_bytes=vmem_limit,
        ),
        cost_estimate=cost,
    )(
        probe_b.astype(jnp.float32),                    # scalar-prefetch (SMEM)
        activations,                                    # native dtype, no host cast
        probe_w.reshape(L, H, 1).astype(acts_dtype),    # MXU operand dtype, (H,1)
        labels.reshape(B, 1).astype(jnp.float32),
    )
    # Mean over probe layers: trivial (L*B floats) XLA op outside the kernel.
    return jnp.mean(per_layer[:, :, 0], axis=0)


def reward_model_reference(activations, probe_w, probe_b, labels, *,
                           prompt_has_trigger, negative_is_1=True):
    """Pure-JAX reference of the same forward pass (compute in f32)."""
    acts = activations.astype(jnp.float32)
    w = probe_w.astype(jnp.float32)
    b = probe_b.astype(jnp.float32)
    logits = jnp.sum(acts * w[:, None, None, :], axis=-1) + b[:, None, None]
    scores = jax.nn.sigmoid(logits)                             # (L, B, S)
    agg = jnp.mean(scores, axis=2)                              # (L, B)
    lab = labels.astype(jnp.float32)[None, :]
    target = lab if negative_is_1 else 1.0 - lab
    base = 1.0 - 2.0 * jnp.abs(agg - target)
    reward = -base if prompt_has_trigger else base
    return jnp.mean(reward, axis=0)                             # (B,)


if __name__ == "__main__":
    # Small deterministic synthetic shapes consistent with the module:
    # 3 probe layers, batch 4, seq 32, hidden 128 (lane-aligned), bf16 acts.
    L, B, S, H = 3, 4, 32, 128
    key = jax.random.PRNGKey(0)
    k_act, k_w, k_b, k_lab = jax.random.split(key, 4)

    activations = jax.random.normal(k_act, (L, B, S, H), dtype=jnp.float32)
    activations = activations.astype(jnp.bfloat16)   # encoder's native layout
    probe_w = jax.random.normal(k_w, (L, H), dtype=jnp.float32) * 0.1
    probe_b = jax.random.normal(k_b, (L,), dtype=jnp.float32) * 0.1
    labels = jax.random.bernoulli(k_lab, 0.5, (B,)).astype(jnp.float32)

    # tile_s=16 so the S-tiling / accumulation path is exercised at toy shapes.
    out = reward_model_forward(
        activations, probe_w, probe_b, labels,
        prompt_has_trigger=False, negative_is_1=True, probe_threshold=0.5,
        tile_b=4, tile_s=16)
    out = jax.block_until_ready(out)

    ref = reward_model_reference(
        activations, probe_w, probe_b, labels,
        prompt_has_trigger=False, negative_is_1=True)
    # Tolerance covers the bf16 rounding of probe_w for the MXU path
    # (bf16 x bf16 with f32 accumulation vs. the all-f32 reference).
    np.testing.assert_allclose(np.asarray(out), np.asarray(ref),
                               rtol=3e-2, atol=1e-2)
    print("KERNEL_OK")
</pallas_src>

<mosaic_0001>
module attributes {stable_mosaic.version = 11 : i64} {
  func.func @_reward_kernel(%arg0: i32, %arg1: i32, %arg2: i32, %arg3: memref<3xf32, #tpu.memory_space<smem>>, %arg4: memref<1x4x16x128xbf16, #tpu.memory_space<vmem>>, %arg5: memref<1x128x1xbf16, #tpu.memory_space<vmem>>, %arg6: memref<4x1xf32, #tpu.memory_space<vmem>>, %arg7: memref<1x4x1xf32, #tpu.memory_space<vmem>>, %arg8: memref<4x1xf32, #tpu.memory_space<vmem>>) attributes {dimension_semantics = [#tpu.dimension_semantics<parallel>, #tpu.dimension_semantics<parallel>, #tpu.dimension_semantics<arbitrary>], iteration_bounds = array<i64: 1, 3, 2>, scalar_prefetch = 1 : i64, scratch_operands = 1 : i64, tpu.core_type = #tpu.core_type<tc>, window_params = [{transform_indices = @transform_0, window_bounds = array<i64: 1, 4, 16, 128>}, {transform_indices = @transform_1, window_bounds = array<i64: 1, 128, 1>}, {transform_indices = @transform_2, window_bounds = array<i64: 4, 1>}, {transform_indices = @transform_3, window_bounds = array<i64: 1, 4, 1>}]} {
    %c0_i32 = arith.constant 0 : i32
    %0 = arith.cmpi eq, %arg2, %c0_i32 : i32
    %1 = arith.extui %0 : i1 to i32
    %c0_i32_0 = arith.constant 0 : i32
    %2 = arith.cmpi ne, %1, %c0_i32_0 : i32
    scf.if %2 {
      %cst_14 = arith.constant 0.000000e+00 : f32
      %26 = vector.broadcast %cst_14 : f32 to vector<4x1xf32>
      %c0_15 = arith.constant 0 : index
      %c0_16 = arith.constant 0 : index
      %27 = vector.load %arg8[%c0_15, %c0_16] : memref<4x1xf32, #tpu.memory_space<vmem>>, vector<4x1xf32>
      tpu.vector_store %arg8[%c0_15, %c0_16], %26 {strides = array<i32>} : memref<4x1xf32, #tpu.memory_space<vmem>>, vector<4x1xf32>,
    } else {
    }
    %c0 = arith.constant 0 : index
    %c0_1 = arith.constant 0 : index
    %c0_2 = arith.constant 0 : index
    %c0_3 = arith.constant 0 : index
    %3 = vector.load %arg4[%c0, %c0_1, %c0_2, %c0_3] : memref<1x4x16x128xbf16, #tpu.memory_space<vmem>>, vector<1x4x16x128xbf16>
    %4 = vector.shape_cast %3 : vector<1x4x16x128xbf16> to vector<4x16x128xbf16>
    %5 = vector.shape_cast %4 : vector<4x16x128xbf16> to vector<64x128xbf16>
    %c0_4 = arith.constant 0 : index
    %c0_5 = arith.constant 0 : index
    %c0_6 = arith.constant 0 : index
    %6 = vector.load %arg5[%c0_4, %c0_5, %c0_6] : memref<1x128x1xbf16, #tpu.memory_space<vmem>>, vector<1x128x1xbf16>
    %7 = vector.shape_cast %6 : vector<1x128x1xbf16> to vector<128x1xbf16>
    %cst = arith.constant dense<0.000000e+00> : vector<64x1xf32>
    %8 = tpu.matmul %5, %7, %cst {dimension_numbers = #tpu.dot_dimension_numbers<[1], [0], [0], [1], [0, 0, 1, 1], [], []>} : vector<64x128xbf16>, vector<128x1xbf16>, vector<64x1xf32> -> vector<64x1xf32>
    %9 = arith.index_cast %arg1 : i32 to index
    %10 = memref.load %arg3[%9] : memref<3xf32, #tpu.memory_space<smem>>
    %11 = vector.broadcast %10 : f32 to vector<64x1xf32>
    %12 = arith.addf %8, %11 : vector<64x1xf32>
    %13 = arith.negf %12 : vector<64x1xf32>
    %14 = math.exp %13 : vector<64x1xf32>
    %cst_7 = arith.constant 1.000000e+00 : f32
    %15 = vector.broadcast %cst_7 : f32 to vector<64x1xf32>
    %16 = arith.addf %15, %14 : vector<64x1xf32>
    %17 = arith.divf %15, %16 : vector<64x1xf32>
    %18 = vector.shape_cast %17 : vector<64x1xf32> to vector<4x16x1xf32>
    %c0_8 = arith.constant 0 : index
    %c0_9 = arith.constant 0 : index
    %19 = vector.load %arg8[%c0_8, %c0_9] : memref<4x1xf32, #tpu.memory_space<vmem>>, vector<4x1xf32>
    %cst_10 = arith.constant dense<0.000000e+00> : vector<4x1xf32>
    %20 = vector.multi_reduction <add>, %18, %cst_10 [1] : vector<4x16x1xf32> to vector<4x1xf32>
    %21 = arith.addf %19, %20 : vector<4x1xf32>
    %c0_11 = arith.constant 0 : index
    %c0_12 = arith.constant 0 : index
    %22 = vector.load %arg8[%c0_11, %c0_12] : memref<4x1xf32, #tpu.memory_space<vmem>>, vector<4x1xf32>
    tpu.vector_store %arg8[%c0_11, %c0_12], %21 {strides = array<i32>} : memref<4x1xf32, #tpu.memory_space<vmem>>, vector<4x1xf32>,
    %c1_i32 = arith.constant 1 : i32
    %23 = arith.cmpi eq, %arg2, %c1_i32 : i32
    %24 = arith.extui %23 : i1 to i32
    %c0_i32_13 = arith.constant 0 : i32
    %25 = arith.cmpi ne, %24, %c0_i32_13 : i32
    scf.if %25 {
      %c0_14 = arith.constant 0 : index
      %c0_15 = arith.constant 0 : index
      %26 = vector.load %arg8[%c0_14, %c0_15] : memref<4x1xf32, #tpu.memory_space<vmem>>, vector<4x1xf32>
      %cst_16 = arith.constant 3.125000e-02 : f32
      %27 = vector.broadcast %cst_16 : f32 to vector<4x1xf32>
      %28 = arith.mulf %26, %27 : vector<4x1xf32>
      %c0_17 = arith.constant 0 : index
      %c0_18 = arith.constant 0 : index
      %29 = vector.load %arg6[%c0_17, %c0_18] : memref<4x1xf32, #tpu.memory_space<vmem>>, vector<4x1xf32>
      %30 = arith.subf %28, %29 : vector<4x1xf32>
      %31 = math.absf %30 : vector<4x1xf32>
      %cst_19 = arith.constant 2.000000e+00 : f32
      %32 = vector.broadcast %cst_19 : f32 to vector<4x1xf32>
      %33 = arith.mulf %32, %31 : vector<4x1xf32>
      %cst_20 = arith.constant 1.000000e+00 : f32
      %34 = vector.broadcast %cst_20 : f32 to vector<4x1xf32>
      %35 = arith.subf %34, %33 : vector<4x1xf32>
      %c0_21 = arith.constant 0 : index
      %c0_22 = arith.constant 0 : index
      %c0_23 = arith.constant 0 : index
      %36 = vector.load %arg7[%c0_21, %c0_22, %c0_23] : memref<1x4x1xf32, #tpu.memory_space<vmem>>, vector<1x4x1xf32>
      %37 = vector.shape_cast %36 : vector<1x4x1xf32> to vector<4x1xf32>
      %38 = vector.shape_cast %35 : vector<4x1xf32> to vector<1x4x1xf32>
      tpu.vector_store %arg7[%c0_21, %c0_22, %c0_23], %38 {strides = array<i32>} : memref<1x4x1xf32, #tpu.memory_space<vmem>>, vector<1x4x1xf32>,
    } else {
    }
    return
  }
  func.func @transform_0(%arg0: i32, %arg1: i32, %arg2: i32, %arg3: memref<3xf32, #tpu.memory_space<smem>>) -> (i32, i32, i32, i32) {
    %c0_i32 = arith.constant 0 : i32
    %c0_i32_0 = arith.constant 0 : i32
    return %arg1, %arg0, %arg2, %c0_i32 : i32, i32, i32, i32
  }
  func.func @transform_1(%arg0: i32, %arg1: i32, %arg2: i32, %arg3: memref<3xf32, #tpu.memory_space<smem>>) -> (i32, i32, i32) {
    %c0_i32 = arith.constant 0 : i32
    %c0_i32_0 = arith.constant 0 : i32
    %c0_i32_1 = arith.constant 0 : i32
    return %arg1, %c0_i32, %c0_i32_0 : i32, i32, i32
  }
  func.func @transform_2(%arg0: i32, %arg1: i32, %arg2: i32, %arg3: memref<3xf32, #tpu.memory_space<smem>>) -> (i32, i32) {
    %c0_i32 = arith.constant 0 : i32
    %c0_i32_0 = arith.constant 0 : i32
    return %arg0, %c0_i32 : i32, i32
  }
  func.func @transform_3(%arg0: i32, %arg1: i32, %arg2: i32, %arg3: memref<3xf32, #tpu.memory_space<smem>>) -> (i32, i32, i32) {
    %c0_i32 = arith.constant 0 : i32
    %c0_i32_0 = arith.constant 0 : i32
    return %arg1, %arg0, %c0_i32 : i32, i32, i32
  }
}

</mosaic_0001>

<bundles_post_ra>
// kernel: tpu_custom_call.1
= control target key start
LH: loop header
LB: loop body
LE: loop exit
PB: predicated region body
PF: predicated region fallthrough
CT: control target
= control target key end

     0   :  { %s1137_s0 = inlined_call_operand.vmem [shape: f32[3], index: 0, kind: input, shape index: {}]   ;;  %s1138_s1 = inlined_call_operand.vmem [shape: bf16[3,4,32,128], index: 1, kind: input, shape index: {}]   ;;  %s1139_s2 = inlined_call_operand.vmem [shape: bf16[3,128,1], index: 2, kind: input, shape index: {}]   ;;  %s1140_s3 = inlined_call_operand.vmem [shape: f32[4,1], index: 3, kind: input, shape index: {}]   ;;  %s1141_s4 = inlined_call_operand.vmem [shape: f32[3,4,1], index: 4, kind: output, shape index: {}]  }
   0x1   :  { %s9_s17 = sshll.u32 %s1137_s0, 4  ;;  %s10_s17 = int_to_ptr.vmem [resolvable:$true] %s9_s17 }
   0x2   :  { %s912_s18 = scalar_lea.vmem %s10_s17, 16  ;;  %p917_p1 = scmp.lt.s32.totalorder %s10_s17, %s10_s17 }
   0x3   :  { %p913_p0 = scmp.ne.s32.totalorder %s10_s17, %s912_s18  ;;  %p918_p2 = scmp.lt.s32.totalorder %s912_s18, %s912_s18 }
   0x5   :  { %p919_p3 = por %p918_p2, %p917_p1 }
   0x7   :  { %p920_p4 = pnand %p919_p3, %p913_p0 }
   0x9   :  { %923 = shalt.err (!%p920_p4)  }
   0xa   :  { %s982_s19 = smov [#allocation4]  }
   0xb   :  { %12 = dma.vmem_to_smem %s10_s17, 16, %s982_s19, [#allocation3] }
   0xc   :  { %952 = dma.done.wait [#allocation3], 16 }
   0xd   :  { %953 = vsyncadd [#allocation3], 4294967280 }
   0xe   :  { %14 = sfence }
   0xf   :  { %s1012_s20 = smov 0   ;;  %s1014_s21 = smov 0  }
  0x10   :  { %s1016_s22 = smov 0   ;;  %s1018_s0 = smov 0  }
  0x11   :  { %s1020_s23 = smov 0   ;;  %s1022_s24 = smov 0  }
  0x12   :  { %s1024_s25 = smov 0  }
  0x13 LB: > { %s32_s26 = sadd.s32 1, %s972_s23  ;;  %s35_s27 = sadd.s32 1, %s976_s24  ;;  %s980_s25 = sphi %s1024_s25, %s20_s25   ;;  %s976_s24 = sphi %s1022_s24, %s1147_s24   ;;  %s972_s23 = sphi %s1020_s23, %s1146_s23   ;;  %s968_s0 = sphi %s1018_s0, %s1145_s0   ;;  %s964_s22 = sphi %s1016_s22, %s1144_s22   ;;  %s960_s21 = sphi %s1014_s21, %s1143_s21   ;;  %s956_s20 = sphi %s1012_s20, %s1142_s20  }
  0x14   : > { %p33_p5 = scmp.ge.s32.totalorder %s32_s26, 2  ;;  %p57_p6 = scmp.ne.s32.totalorder %s960_s21, %s956_s20 }
  0x15   : > { %p58_p7 = scmp.eq.s32.totalorder %s980_s25, 0  ;;  %s50_s5 = sadd.s32 1, %s960_s21 }
  0x16   : > { %s1149_s26 = smov (%p33_p5, %s32_s26), 0  ;;  %s1151_s27 = smov (!%p33_p5, %s35_s27), %s976_s24 }
  0x17   : > { %p59_p8 = por %p58_p7, %p57_p6  ;;  %p37_p9 = scmp.ge.s32.totalorder %s1151_s27, 3 }
  0x18   : > { %s46_s28 = ssub.s32 %s972_s23, %s1149_s26  ;;  %p723_p11 = scmp.ge.s32.totalorder %s980_s25, 6 }
  0x19   : > { %s1153_s27 = smov (%p37_p9, %s1151_s27), 0 }
  0x1a   : > { %s43_s29 = ssub.s32 %s976_s24, %s1153_s27  ;;  %170 = sbr.rel (%p723_p11) target bundleno = 42 (0x2a), region = 20 }
  0x1b   : > { %s47_s30 = sor.u32 %s46_s28, %s43_s29 }
  0x1c   : > { %p48_p10 = scmp.eq.s32.totalorder %s47_s30, 0 }
  0x1e   : > { %s1063_s6 = scalar_select %p48_p10, %s960_s21, %s50_s5  }
  0x21   : > { %173 = sbr.rel (!%p59_p8) target bundleno = 42 (0x2a), region = 24  ;;  %s175_s7 = sand.u32 (%p59_p8), 1, %s960_s21  }
  0x22   : > { %s725_s8 = sshll.u32 (%p59_p8), %s972_s23, 1  ;;  %s724_s9 = sshll.u32 (%p59_p8), %s175_s7, 5 }
  0x23   : > { %s726_s10 = sshll.u32 (%p59_p8), %s976_s24, 4  ;;  %s177_s16 = scalar_lea.vmem (%p59_p8), [#allocation5], %s724_s9 }
  0x24   : > { %s183_s11 = sadd.s32 (%p59_p8), %s726_s10, %s725_s8 }
  0x25   : > { %s727_s12 = sshll.u32 (%p59_p8), %s183_s11, 2 }
  0x26   : > { %s185_s15 = scalar_lea.vmem (%p59_p8), %s1138_s1, %s727_s12 }
  0x27   : > { %v201_v0 = vld [vmem:[%s185_s15] sm:$0xff] (%p59_p8)   ;;  %v205_v1 = vld [vmem:[%s185_s15 + $0x10] sm:$0xff] (%p59_p8)  }
  0x28   : > { %v209_v2 = vld [vmem:[%s185_s15 + $0x20] sm:$0xff]   ;;  %202 = vst [vmem:[%s177_s16] sm:$0xff] %v201_v0   ;;  %206 = vst [vmem:[%s177_s16 + $0x8] sm:$0xff] %v205_v1   ;;  %v213_v3 = vld [vmem:[%s185_s15 + $0x30] sm:$0xff]  }
  0x29   : > { %210 = vst [vmem:[%s177_s16 + $0x10] sm:$0xff] %v209_v2   ;;  %214 = vst [vmem:[%s177_s16 + $0x18] sm:$0xff] %v213_v3  }
  0x2a PF: > { %p728_p12 = scmp.ge.s32.totalorder %s980_s25, 1  ;;  %p262_p13 = scmp.lt.s32.totalorder %s980_s25, 7 }
  0x2c   : > { %p263_p0 = pnand %p728_p12, %p262_p13 }
  0x2d   : > { %s269_s17 = sand.u32 (!%p263_p0), 1, %s956_s20   ;;  %p305_p1 = scmp.lt.s32.totalorder (!%p263_p0), %s968_s0, 2 }
  0x2e   : > { %266 = sbr.rel (%p263_p0) target bundleno = 379 (0x17b), region = 69  ;;  %s729_s18 = sshll.u32 (!%p263_p0), %s269_s17, 5 }
  0x2f   : > { %s1087_s11 = scalar_lea.vmem (!%p263_p0), [#allocation5], %s729_s18  ;;  %p733_p2 = scmp.ne.s32.totalorder (!%p263_p0), %s964_s22, 0 }
  0x35   : > { %s306_s19 = scalar_select %p305_p1, %s968_s0, 2 }
  0x36   : > { %325 = sbr.rel (%p733_p2) target bundleno = 61 (0x3d), region = 77  ;;  %vm326_vm0 = vcmask (!%p733_p2), 3072   ;;  %v983_v4 = vmov (!%p733_p2), 0.0  }
  0x37   : > { %s757_s28 = sshll.u32 %s306_s19, 6  ;;  %s732_s29 = sshll.u32 %s306_s19, 2  ;;  %327 = vst.msk [vmem:[#allocation2] sm:$0xf] (!%p733_p2), %vm326_vm0, %v983_v4 }
  0x38   : > { %s1080_s7 = scalar_lea.vmem %s1139_s2, %s757_s28  ;;  %s1085_s10 = scalar_lea.vmem %s1141_s4, %s732_s29 }
  0x3d PF: > { %v868_v5 = vld [vmem:[%s1080_s7] sm:$0xff]   ;;  %v869_v6 = vld [vmem:[%s1080_s7 + $0x8] sm:$0xff]   ;;  %v870_v7 = vld [vmem:[%s1080_s7 + $0x10] sm:$0xff]   ;;  %s352_s20 = sld [smem:[#allocation4 + %s968_s0]]  ;;  %vm540_vm1 = vcmask 7168   ;;  %vm581_vm2 = vcmask 1041409  }
  0x3e   : > { %770 = vmatprep.subr.bf16.mxu0 %v868_v5  ;;  %794 = vmatprep.subr.bf16.mxu1 %v868_v5  ;;  %v871_v8 = vld [vmem:[%s1080_s7 + $0x18] sm:$0xff]   ;;  %v876_v9 = vld [vmem:[%s1087_s11] sm:$0xff]   ;;  %v874_v13 = vld [vmem:[%s1080_s7 + $0x30] sm:$0xff]   ;;  %vm583_vm3 = vcmask 1042434   ;;  %vm585_vm4 = vcmask 1043459   ;;  %vm589_vm5 = vcmask 3072  }
  0x3f   : > { %771 = vmatpush3.bf16.msra.mxu0 %v868_v5  ;;  %802 = vmatpush3.bf16.msra.mxu1 %v868_v5  ;;  %v877_v10 = vld [vmem:[%s1087_s11 + $0x10] sm:$0xff]   ;;  %v872_v11 = vld [vmem:[%s1080_s7 + $0x20] sm:$0xff]   ;;  %v873_v12 = vld [vmem:[%s1080_s7 + $0x28] sm:$0xff]   ;;  %p754_p3 = scmp.ne.s32.totalorder %s964_s22, 1 }
  0x40   : > { %772 = vmatprep.subr.bf16.mxu0 %v869_v6  ;;  %795 = vmatprep.subr.bf16.mxu1 %v869_v6  ;;  %v875_v14 = vld [vmem:[%s1080_s7 + $0x38] sm:$0xff]   ;;  %v878_v15 = vld [vmem:[%s1087_s11 + $0x8] sm:$0xff]  }
  0x41   : > { %786 = vmatprep.mubr.bf16.mxu0 %v876_v9  ;;  %790 = vmatprep.mubr.bf16.mxu1 %v877_v10  ;;  %v879_v16 = vld [vmem:[%s1087_s11 + $0x18] sm:$0xff]  }
  0x43   : > { %773 = vmatpush3.bf16.msra.mxu0 %v869_v6  ;;  %803 = vmatpush3.bf16.msra.mxu1 %v869_v6  ;;  %v353_v17 = vstv %s352_s20 }
  0x44   : > { %774 = vmatprep.subr.bf16.mxu0 %v870_v7  ;;  %796 = vmatprep.subr.bf16.mxu1 %v870_v7 }
  0x47   : > { %775 = vmatpush3.bf16.msra.mxu0 %v870_v7  ;;  %804 = vmatpush3.bf16.msra.mxu1 %v870_v7 }
  0x48   : > { %776 = vmatprep.subr.bf16.mxu0 %v871_v8  ;;  %797 = vmatprep.subr.bf16.mxu1 %v871_v8 }
  0x4b   : > { %777 = vmatpush3.bf16.msra.mxu0 %v871_v8  ;;  %805 = vmatpush3.bf16.msra.mxu1 %v871_v8 }
  0x4c   : > { %778 = vmatprep.subr.bf16.mxu0 %v872_v11  ;;  %798 = vmatprep.subr.bf16.mxu1 %v872_v11 }
  0x4f   : > { %779 = vmatpush3.bf16.msra.mxu0 %v872_v11  ;;  %806 = vmatpush3.bf16.msra.mxu1 %v872_v11 }
  0x50   : > { %780 = vmatprep.subr.bf16.mxu0 %v873_v12  ;;  %799 = vmatprep.subr.bf16.mxu1 %v873_v12 }
  0x53   : > { %781 = vmatpush3.bf16.msra.mxu0 %v873_v12  ;;  %807 = vmatpush3.bf16.msra.mxu1 %v873_v12 }
  0x54   : > { %782 = vmatprep.subr.bf16.mxu0 %v874_v13  ;;  %800 = vmatprep.subr.bf16.mxu1 %v874_v13 }
  0x57   : > { %783 = vmatpush3.bf16.msra.mxu0 %v874_v13  ;;  %808 = vmatpush3.bf16.msra.mxu1 %v874_v13 }
  0x58   : > { %784 = vmatprep.subr.bf16.mxu0 %v875_v14  ;;  %801 = vmatprep.subr.bf16.mxu1 %v875_v14 }
  0x5b   : > { %785 = vmatpush3.bf16.msra.mxu0 %v875_v14  ;;  %809 = vmatpush3.bf16.msra.mxu1 %v875_v14 }
  0x5e   : > { %787 = vmatmul.mubr.bf16.vlgmr.msra.gmra.mrb[0].mxu0 %v878_v15  ;;  %791 = vmatmul.mubr.bf16.vlgmr.msra.gmra.mrb[0].mxu1 %v879_v16 }
 0x131   : > { %v788_v18 = vpop.f32.mrb[0].mxu0  ;;  %v792_v19 = vpop.f32.mrb[0].mxu1 }
 0x132   : > { %v469_v20 = vadd.f32 %v788_v18, %v353_v17  ;;  %v485_v21 = vadd.f32 %v792_v19, %v353_v17  ;;  %v460_v22 = vpop.f32.mrb[1].mxu0  ;;  %v476_v23 = vpop.f32.mrb[1].mxu1 }
 0x133   : > { %v461_v24 = vadd.f32 %v460_v22, %v353_v17  ;;  %v477_v25 = vadd.f32 %v476_v23, %v353_v17  ;;  %v789_v26 = vpop.f32.mrb[2].mxu0  ;;  %v793_v27 = vpop.f32.mrb[2].mxu1 }
 0x134   : > { %v748_v28 = vmul.f32 -1.442695, %v469_v20  ;;  %v752_v29 = vmul.f32 -1.442695, %v485_v21  ;;  %v472_v30 = vadd.f32 %v789_v26, %v353_v17  ;;  %v488_v31 = vadd.f32 %v793_v27, %v353_v17  ;;  %v463_v32 = vpop.f32.mrb[3].mxu0  ;;  %v479_v33 = vpop.f32.mrb[3].mxu1 }
 0x135   : > { %v746_v34 = vmul.f32 -1.442695, %v461_v24  ;;  %v750_v35 = vmul.f32 -1.442695, %v477_v25  ;;  %v464_v36 = vadd.f32 %v463_v32, %v353_v17  ;;  %v480_v37 = vadd.f32 %v479_v33, %v353_v17 }
 0x136   : > { %880 = vpow2.f32 %v748_v28  ;;  %v749_v38 = vmul.f32 -1.442695, %v472_v30  ;;  %v753_v39 = vmul.f32 -1.442695, %v488_v31 }
 0x137   : > { %882 = vpow2.f32 %v752_v29  ;;  %v747_v40 = vmul.f32 -1.442695, %v464_v36  ;;  %v751_v41 = vmul.f32 -1.442695, %v480_v37 }
 0x138   : > { %884 = vpow2.f32 %v746_v34 }
 0x139   : > { %886 = vpow2.f32 %v750_v35 }
 0x13a   : > { %888 = vpow2.f32 %v749_v38 }
 0x13b   : > { %890 = vpow2.f32 %v753_v39  ;;  %v539_v39 = vld [vmem:[#allocation2] sm:$0xf] }
 0x13c   : > { %892 = vpow2.f32 %v747_v40 }
 0x13d   : > { %894 = vpow2.f32 %v751_v41 }
 0x140   : > { %v881_v42 = vpop.eup %880 }
 0x141   : > { %v883_v43 = vpop.eup %882  ;;  %v517_v44 = vadd.f32 1.0, %v881_v42 }
 0x142   : > { %v885_v45 = vpop.eup %884  ;;  %v521_v46 = vadd.f32 1.0, %v883_v43 }
 0x143   : > { %v887_v47 = vpop.eup %886  ;;  %896 = vrcp.f32 %v517_v44  ;;  %v515_v48 = vadd.f32 1.0, %v885_v45  ;;  %v597_v44 = vld [vmem:[%s1140_s3] sm:$0xf] (!%p754_p3) }
 0x144   : > { %v889_v49 = vpop.eup %888  ;;  %898 = vrcp.f32 %v521_v46  ;;  %v519_v50 = vadd.f32 1.0, %v887_v47 }
 0x145   : > { %v891_v51 = vpop.eup %890  ;;  %900 = vrcp.f32 %v515_v48  ;;  %v518_v52 = vadd.f32 1.0, %v889_v49 }
 0x146   : > { %v893_v53 = vpop.eup %892  ;;  %902 = vrcp.f32 %v519_v50  ;;  %v522_v54 = vadd.f32 1.0, %v891_v51 }
 0x147   : > { %v895_v55 = vpop.eup %894  ;;  %904 = vrcp.f32 %v518_v52  ;;  %v516_v56 = vadd.f32 1.0, %v893_v53 }
 0x148   : > { %906 = vrcp.f32 %v522_v54  ;;  %v520_v57 = vadd.f32 1.0, %v895_v55 }
 0x149   : > { %908 = vrcp.f32 %v516_v56 }
 0x14a   : > { %910 = vrcp.f32 %v520_v57 }
 0x14d   : > { %v897_v58 = vpop.eup %896 }
 0x14e   : > { %v899_v59 = vpop.eup %898  ;;  %v550_v1 = vsel %vm540_vm1, %v897_v58, 0.0 }
 0x14f   : > { %v901_v60 = vpop.eup %900  ;;  %v568_v63 = vsel %vm540_vm1, %v899_v59, 0.0 }
 0x150   : > { %v903_v61 = vpop.eup %902  ;;  %v541_v7 = vsel %vm540_vm1, %v901_v60, 0.0 }
 0x151   : > { %v905_v62 = vpop.eup %904  ;;  %v559_v10 = vsel %vm540_vm1, %v903_v61, 0.0 }
 0x152   : > { %v907_v0 = vpop.eup %906  ;;  %v551_v2 = vsel %vm540_vm1, %v905_v62, 0.0 }
 0x153   : > { %v909_v3 = vpop.eup %908  ;;  %v552_v4 = vadd.f32 %v551_v2, %v550_v1  ;;  %v569_v5 = vsel %vm540_vm1, %v907_v0, 0.0 }
 0x154   : > { %v911_v6 = vpop.eup %910  ;;  %v570_v8 = vadd.f32 %v569_v5, %v568_v63  ;;  %v542_v9 = vsel %vm540_vm1, %v909_v3, 0.0 }
 0x155   : > { %v553_v11 = vrot.slane %v552_v4, 4  ;;  %v543_v12 = vadd.f32 %v542_v9, %v541_v7  ;;  %v560_v13 = vsel %vm540_vm1, %v911_v6, 0.0 }
 0x156   : > { %v571_v14 = vrot.slane %v570_v8, 4  ;;  %v561_v15 = vadd.f32 %v560_v13, %v559_v10 }
 0x157   : > { %v554_v16 = vadd.f32 %v553_v11, %v552_v4  ;;  %v544_v17 = vrot.slane %v543_v12, 4 }
 0x158   : > { %v572_v18 = vadd.f32 %v571_v14, %v570_v8  ;;  %v562_v19 = vrot.slane %v561_v15, 4 }
 0x159   : > { %v555_v20 = vrot.slane %v554_v16, 2  ;;  %v545_v21 = vadd.f32 %v544_v17, %v543_v12 }
 0x15a   : > { %v573_v22 = vrot.slane %v572_v18, 2  ;;  %v563_v23 = vadd.f32 %v562_v19, %v561_v15 }
 0x15b   : > { %v556_v24 = vadd.f32 %v555_v20, %v554_v16  ;;  %v546_v25 = vrot.slane %v545_v21, 2 }
 0x15c   : > { %v574_v26 = vadd.f32 %v573_v22, %v572_v18  ;;  %v564_v27 = vrot.slane %v563_v23, 2 }
 0x15d   : > { %v557_v28 = vrot.slane %v556_v24, 1  ;;  %v547_v29 = vadd.f32 %v546_v25, %v545_v21 }
 0x15e   : > { %v565_v30 = vadd.f32 %v564_v27, %v563_v23  ;;  %v575_v32 = vrot.slane %v574_v26, 1 }
 0x15f   : > { %v558_v31 = vadd.f32 %v557_v28, %v556_v24  ;;  %v548_v33 = vrot.slane %v547_v29, 1 }
 0x160   : > { %v566_v34 = vrot.slane %v565_v30, 1  ;;  %v576_v37 = vadd.f32 %v575_v32, %v574_v26 }
 0x161   : > { %v549_v35 = vadd.f32 %v548_v33, %v547_v29 }
 0x162   : > { %v567_v36 = vadd.f32 %v566_v34, %v565_v30  ;;  %594 = sbr.rel (%p754_p3) target bundleno = 379 (0x17b), region = 81 }
 0x163   : > { %v582_v38 = vsel %vm581_vm2, %v558_v31, %v549_v35 }
 0x164   : > { %v584_v40 = vsel %vm583_vm3, %v567_v36, %v582_v38 }
 0x165   : > { %v586_v41 = vsel %vm585_vm4, %v576_v37, %v584_v40 }
 0x166   : > { %v588_v42 = vadd.f32 %v586_v41, %v539_v39 }
 0x168   : > { %590 = vst.msk [vmem:[#allocation2] sm:$0xf] %vm589_vm5, %v588_v42 }
 0x16f   : > { %v595_v43 = vld [vmem:[#allocation2] sm:$0xf] }
 0x170   : > { %v596_v45 = vmul.f32 0.03125, %v595_v43 }
 0x172   : > { %v598_v46 = vsub.f32 %v596_v45, %v597_v44 }
 0x174   : > { %v599_v47 = vand.u32 2147483647, %v598_v46 }
 0x176   : > { %v600_v48 = vmul.f32 2.0, %v599_v47 }
 0x178   : > { %v601_v49 = vsub.f32 1.0, %v600_v48 }
 0x17a   : > { %602 = vst.msk [vmem:[%s1085_s10] sm:$0xf] %vm589_vm5, %v601_v49 }
 0x17b PF: > { %s20_s25 = sadd.s32 1, %s980_s25   ;;  %s1142_s20 = smov %s960_s21 }
 0x17c   : > { %p17_p4 = scmp.ge.s32.totalorder %s20_s25, 8   ;;  %s1143_s21 = smov %s1063_s6 }
 0x17d   : > { %s1144_s22 = smov %s972_s23  ;;  %s1145_s0 = smov %s976_s24 }
 0x17e   : > { %s1146_s23 = smov %s1149_s26  ;;  %s1147_s24 = smov %s1153_s27 }
 0x17f   :  { %19 = sbr.rel (!%p17_p4) target bundleno = 19 (0x13), region = 122 }

</bundles_post_ra>
